<compile_context>
chip_gen: v7x
topology: tpu7x:2x2x1
jax: 0.10.0
libtpu: 0.0.40
codegen_flags: <defaults>
</compile_context>

<pallas_src>
import functools

import jax
import jax.numpy as jnp
import numpy as np
from jax.experimental import pallas as pl
from jax.experimental.pallas import tpu as pltpu

_LANES = 128
_CHUNK = 8              # sublanes per vreg chunk
_BIG = 1e30             # init value for |d|-min accumulators
_PAD_COORD = 1e6        # sentinel coordinate for padded samples (|d| ~ 1.7e6)


def _round_up(x, m):
    return -(-x // m) * m


def _csg_loss_kernel(centers_ref, radii_ref, slab_ref,
                     recon_out_ref, prox_out_ref, *,
                     num_prims, loss_metric, valid_count,
                     tile_rows, tiles_per_core, padded):
    """Processes one (4, tile_rows, 128) slab tile per grid step.

    centers_ref : (3P,) SMEM      radii_ref : (P,) SMEM
    recon_out_ref : (1, 8, 128)        per-core running recon-term sum
    prox_out_ref  : (1, P_pad, 8, 128) per-core running |d| min per primitive
    Both outputs are resident accumulators along the (arbitrary) tile axis.
    """
    t = pl.program_id(1)

    @pl.when(t == 0)
    def _init():
        recon_out_ref[...] = jnp.zeros(recon_out_ref.shape, recon_out_ref.dtype)
        prox_out_ref[...] = jnp.full(prox_out_ref.shape, _BIG, prox_out_ref.dtype)

    n_chunks = tile_rows // _CHUNK
    tile_row0 = (pl.program_id(0) * tiles_per_core + t) * tile_rows

    if padded:
        # Hoisted iotas (JAX does not CSE broadcast_in_dim inside the loop).
        row_iota = jax.lax.broadcasted_iota(jnp.int32, (_CHUNK, _LANES), 0)
        lane_iota = jax.lax.broadcasted_iota(jnp.int32, (_CHUNK, _LANES), 1)

    def chunk_body(c):
        if isinstance(c, int):
            base = c * _CHUNK
        else:
            base = pl.multiple_of(c * _CHUNK, _CHUNK)
        # Load the 4 planes of this (8, 128) chunk once; they stay
        # register-resident across the unrolled primitive loop.
        px = slab_ref[0, pl.ds(base, _CHUNK), :]
        py = slab_ref[1, pl.ds(base, _CHUNK), :]
        pz = slab_ref[2, pl.ds(base, _CHUNK), :]
        td = slab_ref[3, pl.ds(base, _CHUNK), :]

        refined = None
        for p in range(num_prims):        # small static P -> unrolled VPU code
            cx = centers_ref[3 * p + 0]
            cy = centers_ref[3 * p + 1]
            cz = centers_ref[3 * p + 2]
            r = radii_ref[p]
            dx = px - cx
            dy = py - cy
            dz = pz - cz
            d = jnp.sqrt(dx * dx + dy * dy + dz * dz) - r     # sqrt -> EUP slot
            # CSG union (refined distance) = hard min over primitives.
            refined = d if refined is None else jnp.minimum(refined, d)
            # Deferred proximity reduction: full-vreg elementwise min into the
            # per-primitive accumulator; padded samples use sentinel coords so
            # their |d| (~1.7e6) never wins and no select is needed here.
            prox_out_ref[0, p] = jnp.minimum(prox_out_ref[0, p], jnp.abs(d))

        diff = td - refined
        if padded:
            gidx = (tile_row0 + base + row_iota) * _LANES + lane_iota
            diff = jnp.where(gidx < valid_count, diff, jnp.float32(0.0))
        if loss_metric == "l1":
            contrib = jnp.abs(diff)
        else:  # "mse"
            contrib = diff * diff
        recon_out_ref[0] = recon_out_ref[0] + contrib

    if n_chunks <= 4:
        for c in range(n_chunks):         # tiny tiles: fully unrolled
            chunk_body(c)
    else:
        @pl.loop(0, n_chunks)
        def _(c):
            chunk_body(c)


def csg_loss(target_samples, centers, radii, loss_metric="mse",
             max_tile_rows=512, num_core_splits=2):
    """target_samples: (B, N, 4) = xyz + signed distance."""
    if loss_metric not in ("mse", "l1"):
        raise ValueError(f"unknown loss_metric {loss_metric!r}")
    assert max_tile_rows % _CHUNK == 0

    target_samples = target_samples.astype(jnp.float32)
    B, N, C = target_samples.shape
    assert C == 4, "last dim must be xyz + distance"
    P = int(radii.shape[0])
    P_pad = max(_CHUNK, _round_up(P, _CHUNK))

    total = B * N
    rows_raw = pl.cdiv(total, _LANES)

    # Static tiling: leading "parallel" axis (2 TCs on v7x) x "arbitrary" tiles.
    num_cores = num_core_splits
    rows_per_core = pl.cdiv(rows_raw, num_cores)
    tile_rows = max(_CHUNK, min(max_tile_rows, _round_up(rows_per_core, _CHUNK)))
    tiles_per_core = pl.cdiv(rows_per_core, tile_rows)
    rows_padded = num_cores * tiles_per_core * tile_rows
    pad = rows_padded * _LANES - total

    # Single layout op: transpose the whole (B,N,4) slab so the flattened
    # sample axis lands on TPU lanes, packed as (4, rows_padded, 128).
    # Coordinate planes are padded with a large sentinel (padded |d| is huge);
    # the distance plane is padded with 0 (masked out of the recon mean).
    slab = jnp.transpose(target_samples, (2, 0, 1)).reshape(4, total)
    if pad:
        pad_col = jnp.array([_PAD_COORD, _PAD_COORD, _PAD_COORD, 0.0],
                            jnp.float32)[:, None]
        slab = jnp.concatenate(
            [slab, jnp.broadcast_to(pad_col, (4, pad))], axis=1)
    slab = slab.reshape(4, rows_padded, _LANES)

    centers_flat = centers.astype(jnp.float32).reshape(-1)   # (3P,) SMEM-friendly
    radii_f = radii.astype(jnp.float32)

    kernel = functools.partial(
        _csg_loss_kernel, num_prims=P, loss_metric=loss_metric,
        valid_count=total, tile_rows=tile_rows, tiles_per_core=tiles_per_core,
        padded=(pad != 0))

    slab_tile_bytes = 4 * tile_rows * _LANES * 4
    vmem_limit_bytes = int(max(16 * 1024 * 1024,
                               min(100 * 1024 * 1024,
                                   4 * slab_tile_bytes + 4 * 1024 * 1024)))

    recon_out, prox_out = pl.pallas_call(
        kernel,
        out_shape=(
            jax.ShapeDtypeStruct((num_cores, _CHUNK, _LANES), jnp.float32),
            jax.ShapeDtypeStruct((num_cores, P_pad, _CHUNK, _LANES), jnp.float32),
        ),
        grid=(num_cores, tiles_per_core),
        in_specs=[
            pl.BlockSpec(memory_space=pltpu.MemorySpace.SMEM),   # centers (3P,)
            pl.BlockSpec(memory_space=pltpu.MemorySpace.SMEM),   # radii   (P,)
            pl.BlockSpec((4, tile_rows, _LANES),
                         lambda c, t: (0, c * tiles_per_core + t, 0)),
        ],
        out_specs=(
            pl.BlockSpec((1, _CHUNK, _LANES), lambda c, t: (c, 0, 0)),
            pl.BlockSpec((1, P_pad, _CHUNK, _LANES), lambda c, t: (c, 0, 0, 0)),
        ),
        compiler_params=pltpu.CompilerParams(
            dimension_semantics=("parallel", "arbitrary"),
            vmem_limit_bytes=vmem_limit_bytes),
    )(centers_flat, radii_f, slab)

    # Tiny epilogue reductions in plain XLA (a few KB of data).
    recon = jnp.sum(recon_out) / jnp.float32(total)
    prim_min = jnp.min(prox_out[:, :P], axis=(0, 2, 3))      # (P,)
    prox = jnp.mean(prim_min)
    return recon + prox


def csg_loss_ref(target_samples, centers, radii, loss_metric="mse"):
    """Pure-JAX reference for validation."""
    ts = target_samples.astype(jnp.float32)
    pts = ts[..., :3]                     # (B, N, 3)
    tdist = ts[..., 3]                    # (B, N)
    diff = pts[:, :, None, :] - centers[None, None, :, :]     # (B, N, P, 3)
    prim = jnp.sqrt(jnp.sum(diff * diff, axis=-1)) - radii     # (B, N, P)
    refined = jnp.min(prim, axis=-1)                           # (B, N)
    if loss_metric == "l1":
        recon = jnp.mean(jnp.abs(tdist - refined))
    else:
        recon = jnp.mean((tdist - refined) ** 2)
    prox = jnp.mean(jnp.min(jnp.abs(prim), axis=(0, 1)))
    return recon + prox


if __name__ == "__main__":
    P = 8

    key = jax.random.PRNGKey(0)
    k_pts, k_d, k_c, k_r = jax.random.split(key, 4)

    # Deterministic synthetic CSG-model parameters (sphere primitives).
    centers = 0.5 * jax.random.normal(k_c, (P, 3), jnp.float32)
    radii = 0.2 + 0.3 * jax.random.uniform(k_r, (P,), jnp.float32)

    # Cases cover: padded / unpadded, single / multi tile per core,
    # static chunk loop / pl.loop path.
    cases = [
        (2, 256, 512),    # tiny, padded to one (4,8,128) tile per core
        (2, 250, 512),    # non-multiple-of-128 sample count (masked recon)
        (2, 4096, 16),    # multiple tiles per core (accumulate across t)
        (2, 8192, 512),   # 8 chunks per tile -> pl.loop path, no padding
    ]
    for (B, N, max_tile_rows) in cases:
        points = jax.random.uniform(k_pts, (B, N, 3), jnp.float32, -1.0, 1.0)
        distances = 0.1 * jax.random.normal(k_d, (B, N), jnp.float32)
        target_samples = jnp.concatenate([points, distances[..., None]], axis=-1)

        for metric in ("mse", "l1"):
            loss = csg_loss(target_samples, centers, radii,
                            loss_metric=metric, max_tile_rows=max_tile_rows)
            loss = jax.block_until_ready(loss)
            ref = csg_loss_ref(target_samples, centers, radii, loss_metric=metric)
            np.testing.assert_allclose(np.asarray(loss), np.asarray(ref),
                                       rtol=1e-5, atol=1e-5)

    print("KERNEL_OK")
</pallas_src>

<mosaic_0001>
module attributes {stable_mosaic.version = 11 : i64} {
  func.func @_csg_loss_kernel(%arg0: i32, %arg1: i32, %arg2: memref<24xf32, #tpu.memory_space<smem>>, %arg3: memref<8xf32, #tpu.memory_space<smem>>, %arg4: memref<4x8x128xf32, #tpu.memory_space<vmem>>, %arg5: memref<1x8x128xf32, #tpu.memory_space<vmem>>, %arg6: memref<1x8x8x128xf32, #tpu.memory_space<vmem>>) attributes {dimension_semantics = [#tpu.dimension_semantics<parallel>, #tpu.dimension_semantics<arbitrary>], iteration_bounds = array<i64: 2, 1>, scalar_prefetch = 0 : i64, scratch_operands = 0 : i64, tpu.core_type = #tpu.core_type<tc>, window_params = [{transform_indices = @transform_0, window_bounds = array<i64: 24>}, {transform_indices = @transform_1, window_bounds = array<i64: 8>}, {transform_indices = @transform_2, window_bounds = array<i64: 4, 8, 128>}, {transform_indices = @transform_3, window_bounds = array<i64: 1, 8, 128>}, {transform_indices = @transform_4, window_bounds = array<i64: 1, 8, 8, 128>}]} {
    %c0_i32 = arith.constant 0 : i32
    %0 = arith.cmpi eq, %arg1, %c0_i32 : i32
    %1 = arith.extui %0 : i1 to i32
    %c0_i32_0 = arith.constant 0 : i32
    %2 = arith.cmpi ne, %1, %c0_i32_0 : i32
    scf.if %2 {
      %cst_92 = arith.constant 0.000000e+00 : f32
      %241 = vector.broadcast %cst_92 : f32 to vector<1x8x128xf32>
      %c0_93 = arith.constant 0 : index
      %c0_94 = arith.constant 0 : index
      %c0_95 = arith.constant 0 : index
      %242 = vector.load %arg5[%c0_93, %c0_94, %c0_95] : memref<1x8x128xf32, #tpu.memory_space<vmem>>, vector<1x8x128xf32>
      tpu.vector_store %arg5[%c0_93, %c0_94, %c0_95], %241 {strides = array<i32>} : memref<1x8x128xf32, #tpu.memory_space<vmem>>, vector<1x8x128xf32>,
      %cst_96 = arith.constant 1.000000e+30 : f32
      %243 = vector.broadcast %cst_96 : f32 to vector<1x8x8x128xf32>
      %c0_97 = arith.constant 0 : index
      %c0_98 = arith.constant 0 : index
      %c0_99 = arith.constant 0 : index
      %c0_100 = arith.constant 0 : index
      %244 = vector.load %arg6[%c0_97, %c0_98, %c0_99, %c0_100] : memref<1x8x8x128xf32, #tpu.memory_space<vmem>>, vector<1x8x8x128xf32>
      tpu.vector_store %arg6[%c0_97, %c0_98, %c0_99, %c0_100], %243 {strides = array<i32>} : memref<1x8x8x128xf32, #tpu.memory_space<vmem>>, vector<1x8x8x128xf32>,
    } else {
    }
    %c1_i32 = arith.constant 1 : i32
    %3 = arith.muli %arg0, %c1_i32 : i32
    %4 = arith.addi %3, %arg1 : i32
    %c8_i32 = arith.constant 8 : i32
    %5 = arith.muli %4, %c8_i32 : i32
    %6 = tpu.iota {dimensions = array<i32: 0>} : vector<8x128xi32>
    %7 = tpu.iota {dimensions = array<i32: 1>} : vector<8x128xi32>
    %c0 = arith.constant 0 : index
    %c0_1 = arith.constant 0 : index
    %c0_2 = arith.constant 0 : index
    %8 = vector.load %arg4[%c0, %c0_1, %c0_2] : memref<4x8x128xf32, #tpu.memory_space<vmem>>, vector<1x8x128xf32>
    %9 = vector.shape_cast %8 : vector<1x8x128xf32> to vector<8x128xf32>
    %c1 = arith.constant 1 : index
    %c0_3 = arith.constant 0 : index
    %c0_4 = arith.constant 0 : index
    %10 = vector.load %arg4[%c1, %c0_3, %c0_4] : memref<4x8x128xf32, #tpu.memory_space<vmem>>, vector<1x8x128xf32>
    %11 = vector.shape_cast %10 : vector<1x8x128xf32> to vector<8x128xf32>
    %c2 = arith.constant 2 : index
    %c0_5 = arith.constant 0 : index
    %c0_6 = arith.constant 0 : index
    %12 = vector.load %arg4[%c2, %c0_5, %c0_6] : memref<4x8x128xf32, #tpu.memory_space<vmem>>, vector<1x8x128xf32>
    %13 = vector.shape_cast %12 : vector<1x8x128xf32> to vector<8x128xf32>
    %c3 = arith.constant 3 : index
    %c0_7 = arith.constant 0 : index
    %c0_8 = arith.constant 0 : index
    %14 = vector.load %arg4[%c3, %c0_7, %c0_8] : memref<4x8x128xf32, #tpu.memory_space<vmem>>, vector<1x8x128xf32>
    %15 = vector.shape_cast %14 : vector<1x8x128xf32> to vector<8x128xf32>
    %c0_9 = arith.constant 0 : index
    %16 = memref.load %arg2[%c0_9] : memref<24xf32, #tpu.memory_space<smem>>
    %c1_10 = arith.constant 1 : index
    %17 = memref.load %arg2[%c1_10] : memref<24xf32, #tpu.memory_space<smem>>
    %c2_11 = arith.constant 2 : index
    %18 = memref.load %arg2[%c2_11] : memref<24xf32, #tpu.memory_space<smem>>
    %c0_12 = arith.constant 0 : index
    %19 = memref.load %arg3[%c0_12] : memref<8xf32, #tpu.memory_space<smem>>
    %20 = vector.broadcast %16 : f32 to vector<8x128xf32>
    %21 = arith.subf %9, %20 : vector<8x128xf32>
    %22 = vector.broadcast %17 : f32 to vector<8x128xf32>
    %23 = arith.subf %11, %22 : vector<8x128xf32>
    %24 = vector.broadcast %18 : f32 to vector<8x128xf32>
    %25 = arith.subf %13, %24 : vector<8x128xf32>
    %26 = arith.mulf %21, %21 : vector<8x128xf32>
    %27 = arith.mulf %23, %23 : vector<8x128xf32>
    %28 = arith.addf %26, %27 : vector<8x128xf32>
    %29 = arith.mulf %25, %25 : vector<8x128xf32>
    %30 = arith.addf %28, %29 : vector<8x128xf32>
    %31 = math.sqrt %30 : vector<8x128xf32>
    %32 = vector.broadcast %19 : f32 to vector<8x128xf32>
    %33 = arith.subf %31, %32 : vector<8x128xf32>
    %c0_13 = arith.constant 0 : index
    %c0_14 = arith.constant 0 : index
    %c0_15 = arith.constant 0 : index
    %c0_16 = arith.constant 0 : index
    %34 = vector.load %arg6[%c0_13, %c0_14, %c0_15, %c0_16] : memref<1x8x8x128xf32, #tpu.memory_space<vmem>>, vector<1x1x8x128xf32>
    %35 = vector.shape_cast %34 : vector<1x1x8x128xf32> to vector<8x128xf32>
    %36 = math.absf %33 : vector<8x128xf32>
    %37 = arith.minimumf %35, %36 : vector<8x128xf32>
    %c0_17 = arith.constant 0 : index
    %c0_18 = arith.constant 0 : index
    %c0_19 = arith.constant 0 : index
    %c0_20 = arith.constant 0 : index
    %38 = vector.load %arg6[%c0_17, %c0_18, %c0_19, %c0_20] : memref<1x8x8x128xf32, #tpu.memory_space<vmem>>, vector<1x1x8x128xf32>
    %39 = vector.shape_cast %38 : vector<1x1x8x128xf32> to vector<8x128xf32>
    %40 = vector.shape_cast %37 : vector<8x128xf32> to vector<1x1x8x128xf32>
    tpu.vector_store %arg6[%c0_17, %c0_18, %c0_19, %c0_20], %40 {strides = array<i32>} : memref<1x8x8x128xf32, #tpu.memory_space<vmem>>, vector<1x1x8x128xf32>,
    %c3_21 = arith.constant 3 : index
    %41 = memref.load %arg2[%c3_21] : memref<24xf32, #tpu.memory_space<smem>>
    %c4 = arith.constant 4 : index
    %42 = memref.load %arg2[%c4] : memref<24xf32, #tpu.memory_space<smem>>
    %c5 = arith.constant 5 : index
    %43 = memref.load %arg2[%c5] : memref<24xf32, #tpu.memory_space<smem>>
    %c1_22 = arith.constant 1 : index
    %44 = memref.load %arg3[%c1_22] : memref<8xf32, #tpu.memory_space<smem>>
    %45 = vector.broadcast %41 : f32 to vector<8x128xf32>
    %46 = arith.subf %9, %45 : vector<8x128xf32>
    %47 = vector.broadcast %42 : f32 to vector<8x128xf32>
    %48 = arith.subf %11, %47 : vector<8x128xf32>
    %49 = vector.broadcast %43 : f32 to vector<8x128xf32>
    %50 = arith.subf %13, %49 : vector<8x128xf32>
    %51 = arith.mulf %46, %46 : vector<8x128xf32>
    %52 = arith.mulf %48, %48 : vector<8x128xf32>
    %53 = arith.addf %51, %52 : vector<8x128xf32>
    %54 = arith.mulf %50, %50 : vector<8x128xf32>
    %55 = arith.addf %53, %54 : vector<8x128xf32>
    %56 = math.sqrt %55 : vector<8x128xf32>
    %57 = vector.broadcast %44 : f32 to vector<8x128xf32>
    %58 = arith.subf %56, %57 : vector<8x128xf32>
    %59 = arith.minimumf %33, %58 : vector<8x128xf32>
    %c0_23 = arith.constant 0 : index
    %c1_24 = arith.constant 1 : index
    %c0_25 = arith.constant 0 : index
    %c0_26 = arith.constant 0 : index
    %60 = vector.load %arg6[%c0_23, %c1_24, %c0_25, %c0_26] : memref<1x8x8x128xf32, #tpu.memory_space<vmem>>, vector<1x1x8x128xf32>
    %61 = vector.shape_cast %60 : vector<1x1x8x128xf32> to vector<8x128xf32>
    %62 = math.absf %58 : vector<8x128xf32>
    %63 = arith.minimumf %61, %62 : vector<8x128xf32>
    %c0_27 = arith.constant 0 : index
    %c1_28 = arith.constant 1 : index
    %c0_29 = arith.constant 0 : index
    %c0_30 = arith.constant 0 : index
    %64 = vector.load %arg6[%c0_27, %c1_28, %c0_29, %c0_30] : memref<1x8x8x128xf32, #tpu.memory_space<vmem>>, vector<1x1x8x128xf32>
    %65 = vector.shape_cast %64 : vector<1x1x8x128xf32> to vector<8x128xf32>
    %66 = vector.shape_cast %63 : vector<8x128xf32> to vector<1x1x8x128xf32>
    tpu.vector_store %arg6[%c0_27, %c1_28, %c0_29, %c0_30], %66 {strides = array<i32>} : memref<1x8x8x128xf32, #tpu.memory_space<vmem>>, vector<1x1x8x128xf32>,
    %c6 = arith.constant 6 : index
    %67 = memref.load %arg2[%c6] : memref<24xf32, #tpu.memory_space<smem>>
    %c7 = arith.constant 7 : index
    %68 = memref.load %arg2[%c7] : memref<24xf32, #tpu.memory_space<smem>>
    %c8 = arith.constant 8 : index
    %69 = memref.load %arg2[%c8] : memref<24xf32, #tpu.memory_space<smem>>
    %c2_31 = arith.constant 2 : index
    %70 = memref.load %arg3[%c2_31] : memref<8xf32, #tpu.memory_space<smem>>
    %71 = vector.broadcast %67 : f32 to vector<8x128xf32>
    %72 = arith.subf %9, %71 : vector<8x128xf32>
    %73 = vector.broadcast %68 : f32 to vector<8x128xf32>
    %74 = arith.subf %11, %73 : vector<8x128xf32>
    %75 = vector.broadcast %69 : f32 to vector<8x128xf32>
    %76 = arith.subf %13, %75 : vector<8x128xf32>
    %77 = arith.mulf %72, %72 : vector<8x128xf32>
    %78 = arith.mulf %74, %74 : vector<8x128xf32>
    %79 = arith.addf %77, %78 : vector<8x128xf32>
    %80 = arith.mulf %76, %76 : vector<8x128xf32>
    %81 = arith.addf %79, %80 : vector<8x128xf32>
    %82 = math.sqrt %81 : vector<8x128xf32>
    %83 = vector.broadcast %70 : f32 to vector<8x128xf32>
    %84 = arith.subf %82, %83 : vector<8x128xf32>
    %85 = arith.minimumf %59, %84 : vector<8x128xf32>
    %c0_32 = arith.constant 0 : index
    %c2_33 = arith.constant 2 : index
    %c0_34 = arith.constant 0 : index
    %c0_35 = arith.constant 0 : index
    %86 = vector.load %arg6[%c0_32, %c2_33, %c0_34, %c0_35] : memref<1x8x8x128xf32, #tpu.memory_space<vmem>>, vector<1x1x8x128xf32>
    %87 = vector.shape_cast %86 : vector<1x1x8x128xf32> to vector<8x128xf32>
    %88 = math.absf %84 : vector<8x128xf32>
    %89 = arith.minimumf %87, %88 : vector<8x128xf32>
    %c0_36 = arith.constant 0 : index
    %c2_37 = arith.constant 2 : index
    %c0_38 = arith.constant 0 : index
    %c0_39 = arith.constant 0 : index
    %90 = vector.load %arg6[%c0_36, %c2_37, %c0_38, %c0_39] : memref<1x8x8x128xf32, #tpu.memory_space<vmem>>, vector<1x1x8x128xf32>
    %91 = vector.shape_cast %90 : vector<1x1x8x128xf32> to vector<8x128xf32>
    %92 = vector.shape_cast %89 : vector<8x128xf32> to vector<1x1x8x128xf32>
    tpu.vector_store %arg6[%c0_36, %c2_37, %c0_38, %c0_39], %92 {strides = array<i32>} : memref<1x8x8x128xf32, #tpu.memory_space<vmem>>, vector<1x1x8x128xf32>,
    %c9 = arith.constant 9 : index
    %93 = memref.load %arg2[%c9] : memref<24xf32, #tpu.memory_space<smem>>
    %c10 = arith.constant 10 : index
    %94 = memref.load %arg2[%c10] : memref<24xf32, #tpu.memory_space<smem>>
    %c11 = arith.constant 11 : index
    %95 = memref.load %arg2[%c11] : memref<24xf32, #tpu.memory_space<smem>>
    %c3_40 = arith.constant 3 : index
    %96 = memref.load %arg3[%c3_40] : memref<8xf32, #tpu.memory_space<smem>>
    %97 = vector.broadcast %93 : f32 to vector<8x128xf32>
    %98 = arith.subf %9, %97 : vector<8x128xf32>
    %99 = vector.broadcast %94 : f32 to vector<8x128xf32>
    %100 = arith.subf %11, %99 : vector<8x128xf32>
    %101 = vector.broadcast %95 : f32 to vector<8x128xf32>
    %102 = arith.subf %13, %101 : vector<8x128xf32>
    %103 = arith.mulf %98, %98 : vector<8x128xf32>
    %104 = arith.mulf %100, %100 : vector<8x128xf32>
    %105 = arith.addf %103, %104 : vector<8x128xf32>
    %106 = arith.mulf %102, %102 : vector<8x128xf32>
    %107 = arith.addf %105, %106 : vector<8x128xf32>
    %108 = math.sqrt %107 : vector<8x128xf32>
    %109 = vector.broadcast %96 : f32 to vector<8x128xf32>
    %110 = arith.subf %108, %109 : vector<8x128xf32>
    %111 = arith.minimumf %85, %110 : vector<8x128xf32>
    %c0_41 = arith.constant 0 : index
    %c3_42 = arith.constant 3 : index
    %c0_43 = arith.constant 0 : index
    %c0_44 = arith.constant 0 : index
    %112 = vector.load %arg6[%c0_41, %c3_42, %c0_43, %c0_44] : memref<1x8x8x128xf32, #tpu.memory_space<vmem>>, vector<1x1x8x128xf32>
    %113 = vector.shape_cast %112 : vector<1x1x8x128xf32> to vector<8x128xf32>
    %114 = math.absf %110 : vector<8x128xf32>
    %115 = arith.minimumf %113, %114 : vector<8x128xf32>
    %c0_45 = arith.constant 0 : index
    %c3_46 = arith.constant 3 : index
    %c0_47 = arith.constant 0 : index
    %c0_48 = arith.constant 0 : index
    %116 = vector.load %arg6[%c0_45, %c3_46, %c0_47, %c0_48] : memref<1x8x8x128xf32, #tpu.memory_space<vmem>>, vector<1x1x8x128xf32>
    %117 = vector.shape_cast %116 : vector<1x1x8x128xf32> to vector<8x128xf32>
    %118 = vector.shape_cast %115 : vector<8x128xf32> to vector<1x1x8x128xf32>
    tpu.vector_store %arg6[%c0_45, %c3_46, %c0_47, %c0_48], %118 {strides = array<i32>} : memref<1x8x8x128xf32, #tpu.memory_space<vmem>>, vector<1x1x8x128xf32>,
    %c12 = arith.constant 12 : index
    %119 = memref.load %arg2[%c12] : memref<24xf32, #tpu.memory_space<smem>>
    %c13 = arith.constant 13 : index
    %120 = memref.load %arg2[%c13] : memref<24xf32, #tpu.memory_space<smem>>
    %c14 = arith.constant 14 : index
    %121 = memref.load %arg2[%c14] : memref<24xf32, #tpu.memory_space<smem>>
    %c4_49 = arith.constant 4 : index
    %122 = memref.load %arg3[%c4_49] : memref<8xf32, #tpu.memory_space<smem>>
    %123 = vector.broadcast %119 : f32 to vector<8x128xf32>
    %124 = arith.subf %9, %123 : vector<8x128xf32>
    %125 = vector.broadcast %120 : f32 to vector<8x128xf32>
    %126 = arith.subf %11, %125 : vector<8x128xf32>
    %127 = vector.broadcast %121 : f32 to vector<8x128xf32>
    %128 = arith.subf %13, %127 : vector<8x128xf32>
    %129 = arith.mulf %124, %124 : vector<8x128xf32>
    %130 = arith.mulf %126, %126 : vector<8x128xf32>
    %131 = arith.addf %129, %130 : vector<8x128xf32>
    %132 = arith.mulf %128, %128 : vector<8x128xf32>
    %133 = arith.addf %131, %132 : vector<8x128xf32>
    %134 = math.sqrt %133 : vector<8x128xf32>
    %135 = vector.broadcast %122 : f32 to vector<8x128xf32>
    %136 = arith.subf %134, %135 : vector<8x128xf32>
    %137 = arith.minimumf %111, %136 : vector<8x128xf32>
    %c0_50 = arith.constant 0 : index
    %c4_51 = arith.constant 4 : index
    %c0_52 = arith.constant 0 : index
    %c0_53 = arith.constant 0 : index
    %138 = vector.load %arg6[%c0_50, %c4_51, %c0_52, %c0_53] : memref<1x8x8x128xf32, #tpu.memory_space<vmem>>, vector<1x1x8x128xf32>
    %139 = vector.shape_cast %138 : vector<1x1x8x128xf32> to vector<8x128xf32>
    %140 = math.absf %136 : vector<8x128xf32>
    %141 = arith.minimumf %139, %140 : vector<8x128xf32>
    %c0_54 = arith.constant 0 : index
    %c4_55 = arith.constant 4 : index
    %c0_56 = arith.constant 0 : index
    %c0_57 = arith.constant 0 : index
    %142 = vector.load %arg6[%c0_54, %c4_55, %c0_56, %c0_57] : memref<1x8x8x128xf32, #tpu.memory_space<vmem>>, vector<1x1x8x128xf32>
    %143 = vector.shape_cast %142 : vector<1x1x8x128xf32> to vector<8x128xf32>
    %144 = vector.shape_cast %141 : vector<8x128xf32> to vector<1x1x8x128xf32>
    tpu.vector_store %arg6[%c0_54, %c4_55, %c0_56, %c0_57], %144 {strides = array<i32>} : memref<1x8x8x128xf32, #tpu.memory_space<vmem>>, vector<1x1x8x128xf32>,
    %c15 = arith.constant 15 : index
    %145 = memref.load %arg2[%c15] : memref<24xf32, #tpu.memory_space<smem>>
    %c16 = arith.constant 16 : index
    %146 = memref.load %arg2[%c16] : memref<24xf32, #tpu.memory_space<smem>>
    %c17 = arith.constant 17 : index
    %147 = memref.load %arg2[%c17] : memref<24xf32, #tpu.memory_space<smem>>
    %c5_58 = arith.constant 5 : index
    %148 = memref.load %arg3[%c5_58] : memref<8xf32, #tpu.memory_space<smem>>
    %149 = vector.broadcast %145 : f32 to vector<8x128xf32>
    %150 = arith.subf %9, %149 : vector<8x128xf32>
    %151 = vector.broadcast %146 : f32 to vector<8x128xf32>
    %152 = arith.subf %11, %151 : vector<8x128xf32>
    %153 = vector.broadcast %147 : f32 to vector<8x128xf32>
    %154 = arith.subf %13, %153 : vector<8x128xf32>
    %155 = arith.mulf %150, %150 : vector<8x128xf32>
    %156 = arith.mulf %152, %152 : vector<8x128xf32>
    %157 = arith.addf %155, %156 : vector<8x128xf32>
    %158 = arith.mulf %154, %154 : vector<8x128xf32>
    %159 = arith.addf %157, %158 : vector<8x128xf32>
    %160 = math.sqrt %159 : vector<8x128xf32>
    %161 = vector.broadcast %148 : f32 to vector<8x128xf32>
    %162 = arith.subf %160, %161 : vector<8x128xf32>
    %163 = arith.minimumf %137, %162 : vector<8x128xf32>
    %c0_59 = arith.constant 0 : index
    %c5_60 = arith.constant 5 : index
    %c0_61 = arith.constant 0 : index
    %c0_62 = arith.constant 0 : index
    %164 = vector.load %arg6[%c0_59, %c5_60, %c0_61, %c0_62] : memref<1x8x8x128xf32, #tpu.memory_space<vmem>>, vector<1x1x8x128xf32>
    %165 = vector.shape_cast %164 : vector<1x1x8x128xf32> to vector<8x128xf32>
    %166 = math.absf %162 : vector<8x128xf32>
    %167 = arith.minimumf %165, %166 : vector<8x128xf32>
    %c0_63 = arith.constant 0 : index
    %c5_64 = arith.constant 5 : index
    %c0_65 = arith.constant 0 : index
    %c0_66 = arith.constant 0 : index
    %168 = vector.load %arg6[%c0_63, %c5_64, %c0_65, %c0_66] : memref<1x8x8x128xf32, #tpu.memory_space<vmem>>, vector<1x1x8x128xf32>
    %169 = vector.shape_cast %168 : vector<1x1x8x128xf32> to vector<8x128xf32>
    %170 = vector.shape_cast %167 : vector<8x128xf32> to vector<1x1x8x128xf32>
    tpu.vector_store %arg6[%c0_63, %c5_64, %c0_65, %c0_66], %170 {strides = array<i32>} : memref<1x8x8x128xf32, #tpu.memory_space<vmem>>, vector<1x1x8x128xf32>,
    %c18 = arith.constant 18 : index
    %171 = memref.load %arg2[%c18] : memref<24xf32, #tpu.memory_space<smem>>
    %c19 = arith.constant 19 : index
    %172 = memref.load %arg2[%c19] : memref<24xf32, #tpu.memory_space<smem>>
    %c20 = arith.constant 20 : index
    %173 = memref.load %arg2[%c20] : memref<24xf32, #tpu.memory_space<smem>>
    %c6_67 = arith.constant 6 : index
    %174 = memref.load %arg3[%c6_67] : memref<8xf32, #tpu.memory_space<smem>>
    %175 = vector.broadcast %171 : f32 to vector<8x128xf32>
    %176 = arith.subf %9, %175 : vector<8x128xf32>
    %177 = vector.broadcast %172 : f32 to vector<8x128xf32>
    %178 = arith.subf %11, %177 : vector<8x128xf32>
    %179 = vector.broadcast %173 : f32 to vector<8x128xf32>
    %180 = arith.subf %13, %179 : vector<8x128xf32>
    %181 = arith.mulf %176, %176 : vector<8x128xf32>
    %182 = arith.mulf %178, %178 : vector<8x128xf32>
    %183 = arith.addf %181, %182 : vector<8x128xf32>
    %184 = arith.mulf %180, %180 : vector<8x128xf32>
    %185 = arith.addf %183, %184 : vector<8x128xf32>
    %186 = math.sqrt %185 : vector<8x128xf32>
    %187 = vector.broadcast %174 : f32 to vector<8x128xf32>
    %188 = arith.subf %186, %187 : vector<8x128xf32>
    %189 = arith.minimumf %163, %188 : vector<8x128xf32>
    %c0_68 = arith.constant 0 : index
    %c6_69 = arith.constant 6 : index
    %c0_70 = arith.constant 0 : index
    %c0_71 = arith.constant 0 : index
    %190 = vector.load %arg6[%c0_68, %c6_69, %c0_70, %c0_71] : memref<1x8x8x128xf32, #tpu.memory_space<vmem>>, vector<1x1x8x128xf32>
    %191 = vector.shape_cast %190 : vector<1x1x8x128xf32> to vector<8x128xf32>
    %192 = math.absf %188 : vector<8x128xf32>
    %193 = arith.minimumf %191, %192 : vector<8x128xf32>
    %c0_72 = arith.constant 0 : index
    %c6_73 = arith.constant 6 : index
    %c0_74 = arith.constant 0 : index
    %c0_75 = arith.constant 0 : index
    %194 = vector.load %arg6[%c0_72, %c6_73, %c0_74, %c0_75] : memref<1x8x8x128xf32, #tpu.memory_space<vmem>>, vector<1x1x8x128xf32>
    %195 = vector.shape_cast %194 : vector<1x1x8x128xf32> to vector<8x128xf32>
    %196 = vector.shape_cast %193 : vector<8x128xf32> to vector<1x1x8x128xf32>
    tpu.vector_store %arg6[%c0_72, %c6_73, %c0_74, %c0_75], %196 {strides = array<i32>} : memref<1x8x8x128xf32, #tpu.memory_space<vmem>>, vector<1x1x8x128xf32>,
    %c21 = arith.constant 21 : index
    %197 = memref.load %arg2[%c21] : memref<24xf32, #tpu.memory_space<smem>>
    %c22 = arith.constant 22 : index
    %198 = memref.load %arg2[%c22] : memref<24xf32, #tpu.memory_space<smem>>
    %c23 = arith.constant 23 : index
    %199 = memref.load %arg2[%c23] : memref<24xf32, #tpu.memory_space<smem>>
    %c7_76 = arith.constant 7 : index
    %200 = memref.load %arg3[%c7_76] : memref<8xf32, #tpu.memory_space<smem>>
    %201 = vector.broadcast %197 : f32 to vector<8x128xf32>
    %202 = arith.subf %9, %201 : vector<8x128xf32>
    %203 = vector.broadcast %198 : f32 to vector<8x128xf32>
    %204 = arith.subf %11, %203 : vector<8x128xf32>
    %205 = vector.broadcast %199 : f32 to vector<8x128xf32>
    %206 = arith.subf %13, %205 : vector<8x128xf32>
    %207 = arith.mulf %202, %202 : vector<8x128xf32>
    %208 = arith.mulf %204, %204 : vector<8x128xf32>
    %209 = arith.addf %207, %208 : vector<8x128xf32>
    %210 = arith.mulf %206, %206 : vector<8x128xf32>
    %211 = arith.addf %209, %210 : vector<8x128xf32>
    %212 = math.sqrt %211 : vector<8x128xf32>
    %213 = vector.broadcast %200 : f32 to vector<8x128xf32>
    %214 = arith.subf %212, %213 : vector<8x128xf32>
    %215 = arith.minimumf %189, %214 : vector<8x128xf32>
    %c0_77 = arith.constant 0 : index
    %c7_78 = arith.constant 7 : index
    %c0_79 = arith.constant 0 : index
    %c0_80 = arith.constant 0 : index
    %216 = vector.load %arg6[%c0_77, %c7_78, %c0_79, %c0_80] : memref<1x8x8x128xf32, #tpu.memory_space<vmem>>, vector<1x1x8x128xf32>
    %217 = vector.shape_cast %216 : vector<1x1x8x128xf32> to vector<8x128xf32>
    %218 = math.absf %214 : vector<8x128xf32>
    %219 = arith.minimumf %217, %218 : vector<8x128xf32>
    %c0_81 = arith.constant 0 : index
    %c7_82 = arith.constant 7 : index
    %c0_83 = arith.constant 0 : index
    %c0_84 = arith.constant 0 : index
    %220 = vector.load %arg6[%c0_81, %c7_82, %c0_83, %c0_84] : memref<1x8x8x128xf32, #tpu.memory_space<vmem>>, vector<1x1x8x128xf32>
    %221 = vector.shape_cast %220 : vector<1x1x8x128xf32> to vector<8x128xf32>
    %222 = vector.shape_cast %219 : vector<8x128xf32> to vector<1x1x8x128xf32>
    tpu.vector_store %arg6[%c0_81, %c7_82, %c0_83, %c0_84], %222 {strides = array<i32>} : memref<1x8x8x128xf32, #tpu.memory_space<vmem>>, vector<1x1x8x128xf32>,
    %223 = arith.subf %15, %215 : vector<8x128xf32>
    %c0_i32_85 = arith.constant 0 : i32
    %224 = arith.addi %5, %c0_i32_85 : i32
    %225 = vector.broadcast %224 : i32 to vector<8x128xi32>
    %226 = arith.addi %225, %6 : vector<8x128xi32>
    %c128_i32 = arith.constant 128 : i32
    %227 = vector.broadcast %c128_i32 : i32 to vector<8x128xi32>
    %228 = arith.muli %226, %227 : vector<8x128xi32>
    %229 = arith.addi %228, %7 : vector<8x128xi32>
    %c512_i32 = arith.constant 512 : i32
    %230 = vector.broadcast %c512_i32 : i32 to vector<8x128xi32>
    %231 = arith.cmpi slt, %229, %230 : vector<8x128xi32>
    %cst = arith.constant 0.000000e+00 : f32
    %232 = vector.broadcast %cst : f32 to vector<8x128xf32>
    %233 = arith.select %231, %223, %232 : vector<8x128xi1>, vector<8x128xf32>
    %234 = arith.mulf %233, %233 : vector<8x128xf32>
    %c0_86 = arith.constant 0 : index
    %c0_87 = arith.constant 0 : index
    %c0_88 = arith.constant 0 : index
    %235 = vector.load %arg5[%c0_86, %c0_87, %c0_88] : memref<1x8x128xf32, #tpu.memory_space<vmem>>, vector<1x8x128xf32>
    %236 = vector.shape_cast %235 : vector<1x8x128xf32> to vector<8x128xf32>
    %237 = arith.addf %236, %234 : vector<8x128xf32>
    %c0_89 = arith.constant 0 : index
    %c0_90 = arith.constant 0 : index
    %c0_91 = arith.constant 0 : index
    %238 = vector.load %arg5[%c0_89, %c0_90, %c0_91] : memref<1x8x128xf32, #tpu.memory_space<vmem>>, vector<1x8x128xf32>
    %239 = vector.shape_cast %238 : vector<1x8x128xf32> to vector<8x128xf32>
    %240 = vector.shape_cast %237 : vector<8x128xf32> to vector<1x8x128xf32>
    tpu.vector_store %arg5[%c0_89, %c0_90, %c0_91], %240 {strides = array<i32>} : memref<1x8x128xf32, #tpu.memory_space<vmem>>, vector<1x8x128xf32>,
    return
  }
  func.func @transform_0(%arg0: i32, %arg1: i32) -> i32 {
    %c0_i32 = arith.constant 0 : i32
    %c0_i32_0 = arith.constant 0 : i32
    return %c0_i32 : i32
  }
  func.func @transform_1(%arg0: i32, %arg1: i32) -> i32 {
    %c0_i32 = arith.constant 0 : i32
    %c0_i32_0 = arith.constant 0 : i32
    return %c0_i32 : i32
  }
  func.func @transform_2(%arg0: i32, %arg1: i32) -> (i32, i32, i32) {
    %c1_i32 = arith.constant 1 : i32
    %0 = arith.muli %arg0, %c1_i32 : i32
    %1 = arith.addi %0, %arg1 : i32
    %c0_i32 = arith.constant 0 : i32
    %c0_i32_0 = arith.constant 0 : i32
    %c0_i32_1 = arith.constant 0 : i32
    return %c0_i32, %1, %c0_i32_0 : i32, i32, i32
  }
  func.func @transform_3(%arg0: i32, %arg1: i32) -> (i32, i32, i32) {
    %c0_i32 = arith.constant 0 : i32
    %c0_i32_0 = arith.constant 0 : i32
    %c0_i32_1 = arith.constant 0 : i32
    return %arg0, %c0_i32, %c0_i32_0 : i32, i32, i32
  }
  func.func @transform_4(%arg0: i32, %arg1: i32) -> (i32, i32, i32, i32) {
    %c0_i32 = arith.constant 0 : i32
    %c0_i32_0 = arith.constant 0 : i32
    %c0_i32_1 = arith.constant 0 : i32
    %c0_i32_2 = arith.constant 0 : i32
    return %arg0, %c0_i32, %c0_i32_0, %c0_i32_1 : i32, i32, i32, i32
  }
}

</mosaic_0001>

<bundles_post_ra>
// kernel: tpu_custom_call.1
= control target key start
LH: loop header
LB: loop body
LE: loop exit
PB: predicated region body
PF: predicated region fallthrough
CT: control target
= control target key end

     0   :  { %10 = vsyncpa [#allocation5], 0  ;;  %s1574_s0 = inlined_call_operand.hbm [shape: f32[24], index: 0, kind: input, shape index: {}]   ;;  %s1575_s1 = inlined_call_operand.vmem [shape: f32[8], index: 1, kind: input, shape index: {}]   ;;  %s1576_s2 = inlined_call_operand.hbm [shape: f32[4,16,128], index: 2, kind: input, shape index: {}]   ;;  %s1577_s3 = inlined_call_operand.hbm [shape: f32[2,8,128], index: 3, kind: output, shape index: {0}]   ;;  %s1578_s4 = inlined_call_operand.hbm [shape: f32[2,8,8,128], index: 4, kind: output, shape index: {1}]  }
   0x1   :  { %11 = vsyncpa [#allocation6], 0 }
   0x2   :  { %12 = vsyncpa [#allocation3], 0 }
   0x3   :  { %14 = vsyncpa [#allocation3 + $0x1], 0 }
   0x4   :  { %15 = vsyncpa [#allocation4], 0 }
   0x5   :  { %17 = vsyncpa [#allocation4 + $0x1], 0 }
   0x6   :  { %18 = vsyncpa [#allocation11], 0 }
   0x7   :  { %20 = vsyncpa [#allocation11 + $0x1], 0  ;;  %s1110_s15 = smov 0   ;;  %s1112_s16 = smov 0  }
   0x8   :  { %s1114_s17 = smov 0   ;;  %s1116_s18 = smov 0  }
   0x9   :  { %s1118_s19 = smov 0   ;;  %s1120_s20 = smov 0  }
   0xa LB: > { %s712_s21 = sadd.s32 4294967295, %s1073_s20   ;;  %s713_s22 = sadd.s32 4294967294, %s1073_s20   ;;  %s1073_s20 = sphi %s1120_s20, %s26_s20   ;;  %s1069_s19 = sphi %s1118_s19, %s1599_s19   ;;  %s1065_s18 = sphi %s1116_s18, %s1598_s18   ;;  %s1061_s17 = sphi %s1114_s17, %s1597_s17   ;;  %s1057_s16 = sphi %s1112_s16, %s1596_s16   ;;  %s1053_s15 = sphi %s1110_s15, %s1595_s15  }
   0xb   : > { %s89_s23 = sadd.s32 1, %s1061_s17  ;;  %p96_p0 = scmp.ne.s32.totalorder %s1061_s17, %s1057_s16 }
   0xc   : > { %p97_p1 = scmp.eq.s32.totalorder %s1073_s20, 0  ;;  %p102_p2 = scmp.ne.s32.totalorder %s1057_s16, %s1053_s15 }
   0xd   : > { %p1148_p3 = scmp.eq.s32.totalorder %s712_s21, 0  ;;  %p126_p4 = scmp.eq.s32.totalorder %s712_s21, 1 }
   0xe   : > { %p98_p5 = por %p97_p1, %p96_p0  ;;  %p132_p6 = scmp.eq.s32.totalorder %s713_s22, 1 }
   0xf   : > { %s1583_s24 = scalar_select %p1148_p3, 1, 0 }
  0x10   : > { %p1154_p7 = por %p1148_p3, %p102_p2  ;;  %p1158_p8 = por %p126_p4, %p96_p0 }
  0x11   : > { %p1162_p9 = por %p132_p6, %p102_p2  ;;  %p714_p10 = scmp.ge.s32.totalorder %s1073_s20, 1 }
  0x12   : > { %s1584_s25 = scalar_select %p1154_p7, 1, 0 }
  0x13   : > { %s1585_s26 = scalar_select %p1158_p8, 1, 0 }
  0x14   : > { %s1586_s27 = scalar_select %p1162_p9, 1, 0 }
  0x15   : > { %p165_p11 = scmp.lt.s32.totalorder %s1073_s20, 3  ;;  %p816_p1 = scmp.lt.s32.totalorder %s1073_s20, 2 }
  0x16   : > { %s187_s5 = sshll.u32 %s1575_s1, 4  ;;  %s198_s8 = sand.u32 1, %s1061_s17   ;;  %s188_s5 = int_to_ptr.vmem [resolvable:$true] %s187_s5 }
  0x17   : > { %p1169_p13 = pnand %p714_p10, %p165_p11  ;;  %p1179_p4 = pnand %p816_p1, %p98_p5 }
  0x18   : > { %s38_s9 = sadd.s32 1, %s1069_s19  ;;  %s893_s12 = scalar_lea.hbm %s1574_s0, 16 }
  0x19   : > { %p796_p0 = pneg %p1169_p13  ;;  %p894_p5 = scmp.ne.s32.totalorder %s1574_s0, %s893_s12 }
  0x1a   : > { %p900_p1 = scmp.lt.u32.totalorder %s893_s12, %s1574_s0 }
  0x1b   : > { %p1185_p2 = pnand %p796_p0, %p1148_p3 }
  0x1d   : > { %p895_p6 = pneg %p1185_p2 }
  0x1f   : > { %p896_p10 = pnand %p895_p6, %p894_p5 }
  0x21   : > { %p897_p11 = pneg %p896_p10 }
  0x23   : > { %p902_p0 = pnand %p900_p1, %p897_p11 }
  0x25   : > { %905 = shalt.err (!%p902_p0)
}
  0x26   : > { %s1075_s29 = smov [#allocation2]   ;;  %s906_s11 = scalar_lea.vmem %s188_s5, 16 }
  0x27   : > { %799 = dma.hbm_to_smem (!%p1185_p2), %s1574_s0, 16, %s1075_s29, [#allocation5]  }
  0x28   : > { %p907_p12 = scmp.ne.s32.totalorder %s188_s5, %s906_s11  ;;  %p914_p7 = scmp.lt.s32.totalorder %s188_s5, %s188_s5 }
  0x29   : > { %p915_p5 = scmp.lt.s32.totalorder %s906_s11, %s906_s11 }
  0x2a   : > { %p909_p9 = pnand %p907_p12, %p895_p6 }
  0x2b   : > { %p916_p10 = por %p915_p5, %p914_p7 }
  0x2c   : > { %p910_p8 = pneg %p909_p9 }
  0x2e   : > { %p917_p3 = pnand %p916_p10, %p910_p8 }
  0x30   : > { %920 = shalt.err (!%p917_p3)
}
  0x31   : > { %s1076_s13 = smov [#allocation7]   ;;  %p40_p11 = scmp.ge.s32.totalorder %s38_s9, 2 }
  0x32   : > { %802 = dma.vmem_to_smem (!%p1185_p2), %s188_s5, 16, %s1076_s13, [#allocation6]  }
  0x33   : > { %s718_s12 = sshll.u32 %s198_s8, 5  ;;  %s719_s14 = sshll.u32 %s1069_s19, 7 }
  0x34   : > { %s1601_s9 = smov (%p40_p11, %s38_s9), 0  ;;  %s1217_s7 = scalar_lea.hbm %s1576_s2, %s719_s14 }
  0x35   : > { %s86_s29 = ssub.s32 %s1069_s19, %s1601_s9  ;;  %s202_s30 = scalar_lea.vmem [#allocation8], %s718_s12 }
  0x36   : > { %s209_s5 = sshll.u32 %s202_s30, 4  ;;  %p87_p3 = scmp.eq.s32.totalorder %s86_s29, 0  ;;  %s1221_s5 = int_to_ptr.vmem [resolvable:$true] %s209_s5 }
  0x37   : > { %s1230_s11 = scalar_lea.sflag [#allocation3], %s198_s8  ;;  %s921_s13 = scalar_lea.hbm %s1217_s7, 512 }
  0x38   : > { %s1226_s10 = scalar_select %p87_p3, %s1061_s17, %s89_s23  }
  0x39   : > { %p922_p7 = scmp.ne.s32.totalorder %s1217_s7, %s921_s13  ;;  %p923_p8 = pneg %p1179_p4 }
  0x3a   : > { %s926_s21 = scalar_lea.hbm %s1576_s2, 1024  ;;  %p927_p2 = scmp.lt.u32.totalorder %s1217_s7, %s1576_s2 }
  0x3b   : > { %p924_p9 = pnand %p923_p8, %p922_p7  ;;  %p928_p6 = scmp.lt.u32.totalorder %s926_s21, %s921_s13 }
  0x3c   : > { %p930_p0 = scmp.lt.u32.totalorder %s921_s13, %s1217_s7 }
  0x3d   : > { %p925_p12 = pneg %p924_p9  ;;  %p929_p1 = por %p928_p6, %p927_p2 }
  0x3f   : > { %p931_p5 = por %p930_p0, %p929_p1 }
  0x41   : > { %p932_p10 = pnand %p931_p5, %p925_p12 }
  0x43   : > { %935 = shalt.err (!%p932_p10)
}
  0x44   : > { %s936_s23 = scalar_lea.vmem %s1221_s5, 512  ;;  %s1077_s8 = smov [#allocation8]  }
  0x45   : > { %p937_p11 = scmp.ne.s32.totalorder %s1221_s5, %s936_s23  ;;  %s941_s30 = sshll.u32 %s1077_s8, 4  ;;  %s942_s30 = int_to_ptr.vmem [resolvable:$false] %s941_s30 }
  0x46   : > { %s943_s14 = scalar_lea.vmem %s942_s30, 1024  ;;  %p944_p9 = scmp.lt.s32.totalorder %s1221_s5, %s942_s30 }
  0x47   : > { %p939_p3 = pnand %p937_p11, %p923_p8  ;;  %p945_p2 = scmp.lt.s32.totalorder %s943_s14, %s936_s23 }
  0x49   : > { %p940_p7 = pneg %p939_p3  ;;  %p946_p6 = por %p945_p2, %p944_p9 }
  0x4b   : > { %p947_p1 = pnand %p946_p6, %p940_p7 }
  0x4d   : > { %950 = shalt.err (!%p947_p1)
}
  0x4e   : > { %s1078_s13 = smov 256   ;;  %s1079_s12 = smov 128  }
  0x4f   : > { %s1080_s21 = smov 8   ;;  %221 = sbr.rel (%p1169_p13) target bundleno = 201 (0xc9), region = 32 }
  0x50   : > { %806 = dma.hbm_to_vmem [thread:$0]  (!%p1179_p4), %s1217_s7, 512, %s1221_s5, %s1230_s11, %s1078_s13, %s1079_s12, %s1080_s21  }
  0x51   : > { %p1590_p8 = scmp.ne.s32.totalorder (!%p1169_p13), %s1583_s24, 0 }
  0x56   : > { %1032 = dma.done.wait (%p1590_p8), [#allocation5], 16  }
  0x57   : > { %1034 = vsyncadd (%p1590_p8), [#allocation5], 4294967280 }
  0x58   : > { %1036 = dma.done.wait (%p1590_p8), [#allocation6], 16  }
  0x59   : > { %1038 = vsyncadd (%p1590_p8), [#allocation6], 4294967280  ;;  %s1269_s22 = sand.u32 1, %s1057_s16   ;;  %p1591_p13 = scmp.ne.s32.totalorder %s1584_s25, 0 }
  0x5a   : > { %s723_s28 = sshll.u32 %s1269_s22, 5  ;;  %s232_s6 = scalar_lea.sflag [#allocation3], %s1269_s22 }
  0x5b   : > { %s1273_s7 = scalar_lea.vmem [#allocation8], %s723_s28 }
  0x5c   : > { %1040 = dma.done.wait (%p1591_p13), %s232_s6, 512  }
  0x5d   : > { %1042 = vsyncadd (%p1591_p13), %s232_s6, 4294966784 }
  0x5e   : > { %240 = sfence }
  0x5f   : > { %s293_s5 = sld [smem:[#allocation2]]  ;;  %s730_s24 = sld [smem:[#allocation2 + $0x1]]  ;;  %v1280_v0 = vld [vmem:[%s1273_s7] sm:$0xff]  ;;  %v1283_v1 = vld [vmem:[%s1273_s7 + $0x8] sm:$0xff]  ;;  %v1288_v2 = vld [vmem:[%s1273_s7 + $0x10] sm:$0xff] }
  0x60   : > { %s731_s11 = sld [smem:[#allocation2 + $0x2]]  ;;  %s732_s29 = sld [smem:[#allocation2 + $0x3]] }
  0x61   : > { %s733_s23 = sld [smem:[#allocation2 + $0x4]]  ;;  %s734_s8 = sld [smem:[#allocation2 + $0x5]] }
  0x62   : > { %s738_s30 = sld [smem:[#allocation2 + $0x6]]  ;;  %s1285_s14 = sld [smem:[#allocation2 + $0x7]] }
  0x63   : > { %s1290_s25 = sld [smem:[#allocation2 + $0x8]]  ;;  %s1292_s13 = sld [smem:[#allocation2 + $0x9]] }
  0x64   : > { %s1294_s12 = sld [smem:[#allocation2 + $0xa]]  ;;  %s1301_s21 = sld [smem:[#allocation2 + $0xb]] }
  0x65   : > { %v297_v3 = vstv %s293_s5  ;;  %v299_v4 = vstv %s730_s24  ;;  %s1303_s28 = sld [smem:[#allocation2 + $0xc]]  ;;  %s1305_s6 = sld [smem:[#allocation7]] }
  0x66   : > { %v298_v5 = vsub.f32 %v1280_v0, %v297_v3  ;;  %v300_v6 = vsub.f32 %v1283_v1, %v299_v4  ;;  %v301_v7 = vstv %s731_s11  ;;  %v325_v9 = vstv %s732_s29  ;;  %s1311_s5 = sld [smem:[#allocation2 + $0xd]]  ;;  %s1313_s24 = sld [smem:[#allocation2 + $0xe]] }
  0x67   : > { %v302_v8 = vsub.f32 %v1288_v2, %v301_v7  ;;  %v327_v10 = vstv %s733_s23  ;;  %v326_v13 = vsub.f32 %v1280_v0, %v325_v9  ;;  %v329_v16 = vstv %s734_s8  ;;  %s1317_s11 = sld [smem:[#allocation7 + $0x1]]  ;;  %s1323_s29 = sld [smem:[#allocation2 + $0xf]] }
  0x68   : > { %v303_v11 = vmul.f32 %v298_v5, %v298_v5  ;;  %v304_v12 = vmul.f32 %v300_v6, %v300_v6  ;;  %v328_v14 = vsub.f32 %v1283_v1, %v327_v10  ;;  %v355_v17 = vstv %s738_s30  ;;  %s1325_s23 = sld [smem:[#allocation2 + $0x10]]  ;;  %s1334_s8 = sld [smem:[#allocation2 + $0x11]] }
  0x69   : > { %v306_v15 = vmul.f32 %v302_v8, %v302_v8  ;;  %v330_v19 = vsub.f32 %v1288_v2, %v329_v16  ;;  %v331_v20 = vmul.f32 %v326_v13, %v326_v13  ;;  %v356_v22 = vsub.f32 %v1280_v0, %v355_v17  ;;  %s1336_s30 = sld [smem:[#allocation2 + $0x12]]  ;;  %p1592_p12 = scmp.ne.s32.totalorder %s1585_s26, 0 }
  0x6a   : > { %v305_v18 = vadd.f32 %v304_v12, %v303_v11  ;;  %v332_v21 = vmul.f32 %v328_v14, %v328_v14  ;;  %v357_v23 = vstv %s1285_s14  ;;  %v359_v24 = vstv %s1290_s25  ;;  %s1344_s14 = sld [smem:[#allocation2 + $0x13]]  ;;  %s1353_s25 = sld [smem:[#allocation2 + $0x14]] }
  0x6b   : > { %v334_v27 = vmul.f32 %v330_v19, %v330_v19  ;;  %v358_v28 = vsub.f32 %v1283_v1, %v357_v23  ;;  %v360_v29 = vsub.f32 %v1288_v2, %v359_v24  ;;  %v385_v30 = vstv %s1292_s13  ;;  %s1357_s13 = sld [smem:[#allocation7 + $0x2]] }
  0x6c   : > { %v1315_v25 = vadd.f32 %v306_v15, %v305_v18  ;;  %v333_v26 = vadd.f32 %v332_v21, %v331_v20  ;;  %v387_v31 = vstv %s1294_s12  ;;  %v361_v32 = vmul.f32 %v356_v22, %v356_v22  ;;  %s1372_s12 = sld [smem:[#allocation7 + $0x3]] }
  0x6d   : > { %v362_v34 = vmul.f32 %v358_v28, %v358_v28  ;;  %v386_v35 = vsub.f32 %v1280_v0, %v385_v30  ;;  %v364_v36 = vmul.f32 %v360_v29, %v360_v29  ;;  %v388_v37 = vsub.f32 %v1283_v1, %v387_v31 }
  0x6e   : > { %877 = vrsqrt.f32 %v1315_v25  ;;  %v1328_v33 = vadd.f32 %v334_v27, %v333_v26  ;;  %v389_v38 = vstv %s1301_s21  ;;  %v415_v39 = vstv %s1303_s28  ;;  %s1385_s21 = sld [smem:[#allocation2 + $0x15]]  ;;  %s725_s28 = sshll.u32 %s1269_s22, 6 }
  0x6f   : > { %v363_v40 = vadd.f32 %v362_v34, %v361_v32  ;;  %v390_v41 = vsub.f32 %v1288_v2, %v389_v38  ;;  %v391_v42 = vmul.f32 %v386_v35, %v386_v35  ;;  %v392_v43 = vmul.f32 %v388_v37, %v388_v37 }
  0x70   : > { %879 = vrsqrt.f32 %v1328_v33  ;;  %v315_v44 = vstv %s1305_s6  ;;  %v416_v45 = vsub.f32 %v1280_v0, %v415_v39  ;;  %v417_v46 = vstv %s1311_s5  ;;  %s1392_s6 = sld [smem:[#allocation2 + $0x16]]  ;;  %s1400_s5 = sld [smem:[#allocation2 + $0x17]] }
  0x71   : > { %v419_v47 = vstv %s1313_s24  ;;  %v1346_v48 = vadd.f32 %v364_v36, %v363_v40  ;;  %v393_v49 = vadd.f32 %v392_v43, %v391_v42  ;;  %v394_v50 = vmul.f32 %v390_v41, %v390_v41  ;;  %s1415_s24 = sld [smem:[#allocation7 + $0x4]] }
  0x72   : > { %v418_v51 = vsub.f32 %v1283_v1, %v417_v46  ;;  %v343_v52 = vstv %s1317_s11  ;;  %v420_v53 = vsub.f32 %v1288_v2, %v419_v47  ;;  %v445_v54 = vstv %s1323_s29  ;;  %s1417_s11 = scalar_lea.vmem [#allocation10], %s725_s28  ;;  %s1426_s29 = sld [smem:[#allocation7 + $0x5]] }
  0x73   : > { %v447_v55 = vstv %s1325_s23  ;;  %vm310_vm0 = vcmp.eq.f32.partialorder %v1315_v25, inf  ;;  %vm312_vm1 = vcmp.eq.f32.partialorder %v1315_v25, 0.0  ;;  %881 = vrsqrt.f32 %v1346_v48  ;;  %s1455_s23 = sld [smem:[#allocation7 + $0x6]] }
  0x74   : > { %v421_v56 = vmul.f32 %v416_v45, %v416_v45  ;;  %v313_v57 = vand.u32 2147483648, %v1315_v25  ;;  %v1361_v58 = vadd.f32 %v394_v50, %v393_v49  ;;  %v422_v59 = vmul.f32 %v418_v51, %v418_v51 }
  0x75   : > { %v446_v60 = vsub.f32 %v1280_v0, %v445_v54  ;;  %v424_v62 = vmul.f32 %v420_v53, %v420_v53  ;;  %v448_v63 = vsub.f32 %v1283_v1, %v447_v55  ;;  %v449_v3 = vstv %s1334_s8  ;;  %s726_s8 = sshll.u32 %s1065_s18, 3 }
  0x76   : > { %v475_v4 = vstv %s1336_s30  ;;  %vm338_vm2 = vcmp.eq.f32.partialorder %v1328_v33, inf  ;;  %vm340_vm3 = vcmp.eq.f32.partialorder %v1328_v33, 0.0  ;;  %883 = vrsqrt.f32 %v1361_v58  ;;  %s771_s30 = sld [smem:[#allocation7 + $0x7]] }
  0x77   : > { %v341_v6 = vand.u32 2147483648, %v1328_v33  ;;  %v423_v7 = vadd.f32 %v422_v59, %v421_v56  ;;  %v450_v8 = vsub.f32 %v1288_v2, %v449_v3  ;;  %v451_v9 = vmul.f32 %v446_v60, %v446_v60 }
  0x78   : > { %v878_v61 = vpop.eup %877  ;;  %v452_v12 = vmul.f32 %v448_v63, %v448_v63  ;;  %v476_v13 = vsub.f32 %v1280_v0, %v475_v4  ;;  %v477_v14 = vstv %s1344_s14  ;;  %v479_v22 = vstv %s1353_s25  ;;  %s724_s14 = sshll.u32 %s1269_s22, 3  ;;  %s781_s25 = sshll.u32 %s1065_s18, 10 }
  0x79   : > { %v309_v5 = vmul.f32 %v878_v61, %v1315_v25  ;;  %v1383_v17 = vadd.f32 %v424_v62, %v423_v7  ;;  %v454_v18 = vmul.f32 %v450_v8, %v450_v8  ;;  %v478_v21 = vsub.f32 %v1283_v1, %v477_v14  ;;  %s1484_s28 = scalar_lea.hbm %s1578_s4, %s781_s25 }
  0x7a   : > { %v880_v10 = vpop.eup %879  ;;  %v453_v20 = vadd.f32 %v452_v12, %v451_v9  ;;  %vm368_vm4 = vcmp.eq.f32.partialorder %v1346_v48, inf  ;;  %v373_v24 = vstv %s1357_s13  ;;  %v371_v27 = vand.u32 2147483648, %v1346_v48  ;;  %s574_s13 = sshll.u32 %s1417_s11, 4  ;;  %s1486_s13 = int_to_ptr.vmem [resolvable:$true] %s574_s13 }
  0x7b   : > { %v311_v11 = vsel %vm310_vm0, %v1315_v25, %v309_v5  ;;  %v337_v16 = vmul.f32 %v880_v10, %v1328_v33  ;;  %885 = vrsqrt.f32 %v1383_v17  ;;  %v480_v31 = vsub.f32 %v1288_v2, %v479_v22 }
  0x7c   : > { %v314_v15 = vsel %vm312_vm1, %v313_v57, %v311_v11  ;;  %v1406_v28 = vadd.f32 %v454_v18, %v453_v20  ;;  %v481_v32 = vmul.f32 %v476_v13, %v476_v13  ;;  %v482_v34 = vmul.f32 %v478_v21, %v478_v21 }
  0x7d   : > { %v1388_v19 = vsub.f32 %v314_v15, %v315_v44  ;;  %v339_v23 = vsel %vm338_vm2, %v1328_v33, %v337_v16  ;;  %v882_v29 = vpop.eup %881  ;;  %vm370_vm5 = vcmp.eq.f32.partialorder %v1346_v48, 0.0  ;;  %vm398_vm6 = vcmp.eq.f32.partialorder %v1361_v58, inf }
  0x7e   : > { %v342_v26 = vsel %vm340_vm3, %v341_v6, %v339_v23  ;;  %v367_v36 = vmul.f32 %v882_v29, %v1346_v48  ;;  %887 = vrsqrt.f32 %v1406_v28  ;;  %vm400_vm7 = vcmp.eq.f32.partialorder %v1361_v58, 0.0 }
  0x7f   : > { %v318_v25 = vand.u32 2147483647, %v1388_v19  ;;  %v344_v30 = vsub.f32 %v342_v26, %v343_v52  ;;  %v403_v37 = vstv %s1372_s12  ;;  %v401_v40 = vand.u32 2147483648, %v1361_v58 }
  0x80   : > { %v884_v38 = vpop.eup %883  ;;  %v369_v39 = vsel %vm368_vm4, %v1346_v48, %v367_v36  ;;  %v483_v41 = vadd.f32 %v482_v34, %v481_v32  ;;  %v484_v42 = vmul.f32 %v480_v31, %v480_v31  ;;  %v505_v46 = vstv %s1385_s21 }
  0x81   : > { %v319_v35 = vmin.f32 %v318_v25, 1e+30  ;;  %v348_v33 = vand.u32 2147483647, %v344_v30  ;;  %v372_v44 = vsel %vm370_vm5, %v371_v27, %v369_v39  ;;  %v397_v45 = vmul.f32 %v884_v38, %v1361_v58 }
  0x82   : > { %v374_v47 = vsub.f32 %v372_v44, %v373_v24  ;;  %v1428_v49 = vadd.f32 %v484_v42, %v483_v41  ;;  %v506_v50 = vsub.f32 %v1280_v0, %v505_v46  ;;  %v507_v51 = vstv %s1392_s6  ;;  %s776_s6 = sshll.u32 %s1065_s18, 7 }
  0x83   : > { %320 = vst [vmem:[%s1417_s11] sm:$0xff] %v319_v35  ;;  %v349_v43 = vmin.f32 %v348_v33, 1e+30  ;;  %v399_v48 = vsel %vm398_vm6, %v1361_v58, %v397_v45  ;;  %v508_v52 = vsub.f32 %v1283_v1, %v507_v51  ;;  %v509_v53 = vstv %s1400_s5 }
  0x84   : > { %v378_v54 = vand.u32 2147483647, %v374_v47  ;;  %v402_v55 = vsel %vm400_vm7, %v401_v40, %v399_v48  ;;  %vm428_vm8 = vcmp.eq.f32.partialorder %v1383_v17, inf  ;;  %889 = vrsqrt.f32 %v1428_v49 }
  0x85   : > { %737 = vst [vmem:[%s1417_s11 + $0x8] sm:$0xff] %v349_v43  ;;  %v886_v0 = vpop.eup %885  ;;  %v345_v56 = vmin.f32 %v1388_v19, %v344_v30  ;;  %v404_v57 = vsub.f32 %v402_v55, %v403_v37  ;;  %vm430_vm9 = vcmp.eq.f32.partialorder %v1383_v17, 0.0  ;;  %v431_v59 = vand.u32 2147483648, %v1383_v17 }
  0x86   : > { %v379_v1 = vmin.f32 %v378_v54, 1e+30  ;;  %v427_v60 = vmul.f32 %v886_v0, %v1383_v17  ;;  %v510_v61 = vsub.f32 %v1288_v2, %v509_v53  ;;  %v511_v58 = vmul.f32 %v506_v50, %v506_v50  ;;  %v729_v50 = vld [vmem:[%s1273_s7 + $0x18] sm:$0xff]  ;;  %s1490_s7 = scalar_lea.vmem [#allocation9], %s724_s14 }
  0x87   : > { %v408_v62 = vand.u32 2147483647, %v404_v57  ;;  %v433_v63 = vstv %s1415_s24  ;;  %vm458_vm10 = vcmp.eq.f32.partialorder %v1406_v28, inf  ;;  %v512_v3 = vmul.f32 %v508_v52, %v508_v52  ;;  %s561_s5 = sshll.u32 %s1490_s7, 4  ;;  %s548_s24 = scalar_lea.sflag [#allocation11], %s1269_s22  ;;  %s1526_s5 = int_to_ptr.vmem [resolvable:$true] %s561_s5 }
  0x88   : > { %v888_v4 = vpop.eup %887  ;;  %743 = vst [vmem:[%s1417_s11 + $0x10] sm:$0xff] %v379_v1  ;;  %v429_v5 = vsel %vm428_vm8, %v1383_v17, %v427_v60  ;;  %vm460_vm11 = vcmp.eq.f32.partialorder %v1406_v28, 0.0  ;;  %v461_v6 = vand.u32 2147483648, %v1406_v28  ;;  %v514_v2 = vmul.f32 %v510_v61, %v510_v61 }
  0x89   : > { %v409_v7 = vmin.f32 %v408_v62, 1e+30  ;;  %v432_v8 = vsel %vm430_vm9, %v431_v59, %v429_v5  ;;  %v457_v9 = vmul.f32 %v888_v4, %v1406_v28  ;;  %v513_v10 = vadd.f32 %v512_v3, %v511_v58 }
  0x8a   : > { %v375_v11 = vmin.f32 %v345_v56, %v374_v47  ;;  %v434_v12 = vsub.f32 %v432_v8, %v433_v63  ;;  %v463_v13 = vstv %s1426_s29  ;;  %v282_v16 = vlaneseq  ;;  %s951_s29 = scalar_lea.vmem %s1486_s13, 1024 }
  0x8b   : > { %749 = vst [vmem:[%s1417_s11 + $0x18] sm:$0xff] %v409_v7  ;;  %v459_v14 = vsel %vm458_vm10, %v1406_v28, %v457_v9  ;;  %v515_v15 = vadd.f32 %v514_v2, %v513_v10  ;;  %vm488_vm12 = vcmp.eq.f32.partialorder %v1428_v49, inf  ;;  %v491_v23 = vand.u32 2147483648, %v1428_v49  ;;  %p952_p4 = scmp.ne.s32.totalorder %s1486_s13, %s951_s29 }
  0x8c   : > { %v438_v18 = vand.u32 2147483647, %v434_v12  ;;  %v462_v17 = vsel %vm460_vm11, %v461_v6, %v459_v14  ;;  %v405_v21 = vmin.f32 %v375_v11, %v404_v57  ;;  %vm490_vm13 = vcmp.eq.f32.partialorder %v1428_v49, 0.0 }
  0x8d   : > { %v464_v19 = vsub.f32 %v462_v17, %v463_v13  ;;  %891 = vrsqrt.f32 %v515_v15  ;;  %v283_v26 = vshrl.u32 %v282_v16, 7  ;;  %v493_v27 = vstv %s1455_s23  ;;  %p953_p0 = pnand %p952_p4, %p1592_p12  ;;  %s1081_s23 = smov [#allocation10]  }
  0x8e   : > { %v890_v20 = vpop.eup %889  ;;  %v439_v22 = vmin.f32 %v438_v18, 1e+30  ;;  %v532_v28 = vstv %s726_s8  ;;  %v435_v31 = vmin.f32 %v405_v21, %v434_v12  ;;  %v285_v37 = vand.u32 127, %v282_v16  ;;  %s955_s8 = sshll.u32 %s1081_s23, 4  ;;  %s956_s8 = int_to_ptr.vmem [resolvable:$false] %s955_s8 }
  0x8f   : > { %v468_v24 = vand.u32 2147483647, %v464_v19  ;;  %v487_v25 = vmul.f32 %v890_v20, %v1428_v49  ;;  %v533_v35 = vadd.s32 %v532_v28, %v283_v26  ;;  %vm518_vm14 = vcmp.eq.f32.partialorder %v515_v15, inf  ;;  %p954_p5 = pneg %p953_p0  ;;  %p958_p10 = scmp.lt.s32.totalorder %s1486_s13, %s956_s8 }
  0x90   : > { %755 = vst [vmem:[%s1417_s11 + $0x20] sm:$0xff] %v439_v22  ;;  %v465_v33 = vmin.f32 %v435_v31, %v464_v19  ;;  %v521_v40 = vand.u32 2147483648, %v515_v15  ;;  %vm520_vm15 = vcmp.eq.f32.partialorder %v515_v15, 0.0  ;;  %v523_v43 = vstv %s771_s30  ;;  %s957_s30 = scalar_lea.vmem %s956_s8, 2048 }
  0x91   : > { %v469_v29 = vmin.f32 %v468_v24, 1e+30  ;;  %v489_v30 = vsel %vm488_vm12, %v1428_v49, %v487_v25  ;;  %v534_v41 = vmul.u32 128, %v533_v35  ;;  %p959_p11 = scmp.lt.s32.totalorder %s957_s30, %s951_s29 }
  0x92   : > { %v492_v32 = vsel %vm490_vm13, %v491_v23, %v489_v30 }
  0x93   : > { %761 = vst [vmem:[%s1417_s11 + $0x28] sm:$0xff] %v469_v29  ;;  %v494_v34 = vsub.f32 %v492_v32, %v493_v27  ;;  %v535_v47 = vadd.s32 %v534_v41, %v285_v37  ;;  %p960_p3 = por %p959_p11, %p958_p10 }
  0x95   : > { %v498_v36 = vand.u32 2147483647, %v494_v34  ;;  %v495_v44 = vmin.f32 %v465_v33, %v494_v34  ;;  %vm536_vm0 = vcmp.lt.s32.totalorder %v535_v47, 512  ;;  %p961_p7 = pnand %p960_p3, %p954_p5 }
  0x97   : > { %v892_v38 = vpop.eup %891  ;;  %v499_v39 = vmin.f32 %v498_v36, 1e+30 }
  0x98   : > { %v517_v42 = vmul.f32 %v892_v38, %v515_v15 }
  0x99   : > { %767 = vst [vmem:[%s1417_s11 + $0x30] sm:$0xff] %v499_v39 }
  0x9a   : > { %v519_v45 = vsel %vm518_vm14, %v515_v15, %v517_v42 }
  0x9b   : > { %v522_v46 = vsel %vm520_vm15, %v521_v40, %v519_v45 }
  0x9c   : > { %v524_v49 = vsub.f32 %v522_v46, %v523_v43 }
  0x9e   : > { %v525_v51 = vmin.f32 %v495_v44, %v524_v49  ;;  %v528_v48 = vand.u32 2147483647, %v524_v49 }
  0xa0   : > { %v529_v52 = vmin.f32 %v528_v48, 1e+30  ;;  %v531_v53 = vsub.f32 %v729_v50, %v525_v51 }
  0xa2   : > { %773 = vst [vmem:[%s1417_s11 + $0x38] sm:$0xff] %v529_v52  ;;  %v537_v54 = vsel %vm536_vm0, %v531_v53, 0.0 }
  0xa3   : > { %v538_v55 = vmul.f32 %v537_v54, %v537_v54 }
  0xa4   : > { %964 = shalt.err (!%p961_p7)
}
  0xa5   : > { %s965_s11 = scalar_lea.hbm %s1484_s28, 1024  ;;  %s969_s12 = scalar_lea.hbm %s1578_s4, 2048 }
  0xa6   : > { %p966_p9 = scmp.ne.s32.totalorder %s1484_s28, %s965_s11  ;;  %p970_p1 = scmp.lt.u32.totalorder %s1484_s28, %s1578_s4 }
  0xa7   : > { %p971_p8 = scmp.lt.u32.totalorder %s969_s12, %s965_s11  ;;  %p973_p4 = scmp.lt.u32.totalorder %s965_s11, %s1484_s28 }
  0xa8   : > { %p967_p2 = pnand %p966_p9, %p1592_p12 }
  0xa9   : > { %p972_p13 = por %p971_p8, %p970_p1 }
  0xaa   : > { %p968_p6 = pneg %p967_p2 }
  0xab   : > { %p974_p0 = por %p973_p4, %p972_p13 }
  0xad   : > { %p975_p5 = pnand %p974_p0, %p968_p6 }
  0xaf   : > { %978 = shalt.err (!%p975_p5)
}
  0xb0   : > { %s1082_s29 = smov 128   ;;  %s1083_s8 = smov 8   ;;  %541 = vst [vmem:[%s1490_s7] sm:$0xff] %v538_v55 }
  0xb1   : > { %793 = dma.vmem_to_hbm [thread:$0]  (%p1592_p12), %s1486_s13, 1024, %s1484_s28, %s548_s24, %s1082_s29, %s1082_s29, %s1083_s8  }
  0xb2   : > { %s1522_s14 = scalar_lea.hbm %s1577_s3, %s776_s6  ;;  %s543_s25 = scalar_lea.sflag [#allocation4], %s1269_s22 }
  0xb3   : > { %s979_s12 = scalar_lea.vmem %s1526_s5, 128  ;;  %s1084_s13 = smov [#allocation9]  }
  0xb4   : > { %p980_p10 = scmp.ne.s32.totalorder %s1526_s5, %s979_s12  ;;  %s983_s18 = sshll.u32 %s1084_s13, 4  ;;  %s984_s18 = int_to_ptr.vmem [resolvable:$false] %s983_s18 }
  0xb5   : > { %s985_s28 = scalar_lea.vmem %s984_s18, 256  ;;  %p986_p7 = scmp.lt.s32.totalorder %s1526_s5, %s984_s18 }
  0xb6   : > { %p981_p11 = pnand %p980_p10, %p1592_p12  ;;  %p987_p9 = scmp.lt.s32.totalorder %s985_s28, %s979_s12 }
  0xb8   : > { %p982_p3 = pneg %p981_p11  ;;  %p988_p2 = por %p987_p9, %p986_p7 }
  0xba   : > { %p989_p6 = pnand %p988_p2, %p982_p3 }
  0xbc   : > { %992 = shalt.err (!%p989_p6)
}
  0xbd   : > { %s993_s22 = scalar_lea.hbm %s1522_s14, 128  ;;  %s997_s24 = scalar_lea.hbm %s1577_s3, 256 }
  0xbe   : > { %p994_p1 = scmp.ne.s32.totalorder %s1522_s14, %s993_s22  ;;  %p998_p4 = scmp.lt.u32.totalorder %s1522_s14, %s1577_s3 }
  0xbf   : > { %p999_p0 = scmp.lt.u32.totalorder %s997_s24, %s993_s22  ;;  %p1001_p10 = scmp.lt.u32.totalorder %s993_s22, %s1522_s14 }
  0xc0   : > { %p995_p8 = pnand %p994_p1, %p1592_p12 }
  0xc1   : > { %p1000_p5 = por %p999_p0, %p998_p4 }
  0xc2   : > { %p996_p13 = pneg %p995_p8 }
  0xc3   : > { %p1002_p11 = por %p1001_p10, %p1000_p5 }
  0xc5   : > { %p1003_p3 = pnand %p1002_p11, %p996_p13 }
  0xc7   : > { %1006 = shalt.err (!%p1003_p3)
}
  0xc8   : > { %792 = dma.vmem_to_hbm [thread:$0]  (%p1592_p12), %s1526_s5, 128, %s1522_s14, %s543_s25  }
  0xc9 PF: > { %s589_s29 = sand.u32 1, %s1053_s15   ;;  %p1593_p7 = scmp.ne.s32.totalorder %s1586_s27, 0 }
  0xca   : > { %p1594_p9 = scmp.ge.s32.totalorder %s1073_s20, 2  ;;  %s590_s8 = scalar_lea.sflag [#allocation4], %s589_s29 }
  0xcc   : > { %p808_p2 = pnand %p1594_p9, %p1593_p7 }
  0xce   : > { %1044 = dma.done.wait (!%p808_p2), %s590_s8, 128  }
  0xcf   : > { %1046 = vsyncadd (!%p808_p2), %s590_s8, 4294967168  ;;  %s599_s30 = scalar_lea.sflag [#allocation11], %s589_s29 }
  0xd0   : > { %1048 = dma.done.wait (!%p808_p2), %s599_s30, 1024  }
  0xd1   : > { %1050 = vsyncadd (!%p808_p2), %s599_s30, 4294966272  ;;  %s26_s20 = sadd.s32 1, %s1073_s20   ;;  %s1595_s15 = smov %s1057_s16 }
  0xd2   : > { %p23_p6 = scmp.ge.s32.totalorder %s26_s20, 4   ;;  %s1596_s16 = smov %s1061_s17 }
  0xd3   : > { %s1597_s17 = smov %s1226_s10  ;;  %s1598_s18 = smov %s1069_s19 }
  0xd4   : > { %s1599_s19 = smov %s1601_s9  ;;  %25 = sbr.rel (!%p23_p6) target bundleno = 10 (0xa), region = 118 }
  0xdb   :  { %604 = vsyncpa [#allocation3], 1 }
  0xdc   :  { %606 = vsyncpa [#allocation3 + $0x1], 1 }
  0xdd   :  { %607 = vsyncpa [#allocation4], 1 }
  0xde   :  { %609 = vsyncpa [#allocation4 + $0x1], 1 }
  0xdf   :  { %610 = vsyncpa [#allocation11], 1 }
  0xe0   :  { %612 = vsyncpa [#allocation11 + $0x1], 1 }
  0xe1   :  { %613 = vsyncpa [#allocation5], 1 }
  0xe2   :  { %615 = vsyncpa [#allocation5 + $0x1], 1 }
  0xe3   :  { %616 = vsyncpa [#allocation6], 1 }
  0xe4   :  { %618 = vsyncpa [#allocation6 + $0x1], 1 }

</bundles_post_ra>
